<compile_context>
chip_gen: v7x
topology: tpu7x:2x2x1
jax: 0.10.0
libtpu: 0.0.40
codegen_flags: <defaults>
</compile_context>

<pallas_src>
import math

import jax
import jax.numpy as jnp
from jax.experimental import pallas as pl
from jax.experimental.pallas import tpu as pltpu


def _choose_tile(dim, candidates):
    """Largest candidate that evenly divides `dim`, else the full dim (single block)."""
    for c in candidates:
        if dim % c == 0:
            return c
    return dim


def _nl_matmul_kernel(x_ref, wn_ref, b_ref, o_ref, acc_ref):
    # x_ref: (tm, tk) inputs; wn_ref: (tk, tn) normalized weight.T tile; b_ref: (1, tn).
    @pl.when(pl.program_id(2) == 0)
    def _init():
        acc_ref[...] = jnp.zeros_like(acc_ref)

    acc_ref[...] += jnp.dot(
        x_ref[...], wn_ref[...], preferred_element_type=jnp.float32
    )

    @pl.when(pl.program_id(2) == pl.num_programs(2) - 1)
    def _finalize():
        o_ref[...] = (acc_ref[...] + b_ref[...].astype(jnp.float32)).astype(o_ref.dtype)


def normalized_linear(x, weight, bias=None, *, tm=None, tn=None, tk=None):
    """x: (batch, in_features); weight: (out, in); bias: (out,) or None -> (batch, out)."""
    batch, in_features = x.shape
    out_features = weight.shape[0]

    # Per-column L2 norm over out_features (PyTorch dim=0) folded into the transposed
    # weight in a single fused wrapper pass: w_n_t = weight.T / ||weight[:, k]||.
    w32 = weight.astype(jnp.float32)
    inv_norm = jax.lax.rsqrt(jnp.sum(w32 * w32, axis=0))            # (in,)
    w_n_t = (w32.T * inv_norm[:, None]).astype(weight.dtype)        # (in, out)

    if bias is None:
        bias_2d = jnp.zeros((1, out_features), jnp.float32)
    else:
        bias_2d = bias.reshape(1, out_features).astype(jnp.float32)

    # Lane-dense tiles (multiples of 128 in the lane dim), full-dim fallback.
    tm = tm or _choose_tile(batch, (256, 128, 64, 32, 16, 8))
    tn = tn or _choose_tile(out_features, (512, 256, 128))
    tk = tk or _choose_tile(in_features, (512, 256, 128))

    grid = (batch // tm, out_features // tn, in_features // tk)

    flops = 2 * batch * out_features * in_features
    bytes_accessed = (
        x.size * x.dtype.itemsize
        + w_n_t.size * w_n_t.dtype.itemsize
        + bias_2d.size * 4
        + batch * out_features * x.dtype.itemsize
    )

    return pl.pallas_call(
        _nl_matmul_kernel,
        out_shape=jax.ShapeDtypeStruct((batch, out_features), x.dtype),
        grid_spec=pltpu.PrefetchScalarGridSpec(
            num_scalar_prefetch=0,
            grid=grid,
            in_specs=[
                pl.BlockSpec((tm, tk), lambda i, j, k: (i, k)),   # x
                pl.BlockSpec((tk, tn), lambda i, j, k: (k, j)),   # normalized weight.T
                pl.BlockSpec((1, tn), lambda i, j, k: (0, j)),    # bias
            ],
            out_specs=pl.BlockSpec((tm, tn), lambda i, j, k: (i, j)),
            scratch_shapes=[pltpu.VMEM((tm, tn), jnp.float32)],
        ),
        compiler_params=pltpu.CompilerParams(
            dimension_semantics=("parallel", "parallel", "arbitrary"),
            vmem_limit_bytes=48 * 1024 * 1024,
        ),
        cost_estimate=pl.CostEstimate(
            flops=flops, transcendentals=0, bytes_accessed=bytes_accessed
        ),
    )(x, w_n_t, bias_2d)


def _reference(x, weight, bias):
    col_norm = jnp.sqrt(jnp.sum(weight.astype(jnp.float32) ** 2, axis=0, keepdims=True))
    w_n = weight / col_norm
    y = x @ w_n.T
    if bias is not None:
        y = y + bias[None, :]
    return y


if __name__ == "__main__":
    in_features = 32
    out_features = 16
    batch = 8

    key = jax.random.PRNGKey(0)
    k_w, k_b, k_x = jax.random.split(key, 3)

    # kaiming_uniform_(a=sqrt(5)) equivalent: bound = 1/sqrt(fan_in)
    fan_in = in_features
    w_bound = math.sqrt(1.0 / fan_in)
    weight = jax.random.uniform(
        k_w, (out_features, in_features), jnp.float32, -w_bound, w_bound)
    b_bound = 1.0 / math.sqrt(fan_in)
    bias = jax.random.uniform(k_b, (out_features,), jnp.float32, -b_bound, b_bound)

    x = jax.random.normal(k_x, (batch, in_features), jnp.float32)

    y = normalized_linear(x, weight, bias)
    y = jax.block_until_ready(y)

    y_ref = _reference(x, weight, bias)
    assert y.shape == (batch, out_features)
    assert jnp.allclose(y, y_ref, atol=1e-5, rtol=1e-5), "mismatch vs reference"

    # NOTE: all-zero weight columns give NaN (division by zero), matching PyTorch.
    print("KERNEL_OK")
</pallas_src>

<mosaic_0001>
module attributes {stable_mosaic.version = 11 : i64} {
  func.func @_nl_matmul_kernel(%arg0: i32, %arg1: i32, %arg2: i32, %arg3: memref<8x32xf32, #tpu.memory_space<vmem>>, %arg4: memref<32x16xf32, #tpu.memory_space<vmem>>, %arg5: memref<1x16xf32, #tpu.memory_space<vmem>>, %arg6: memref<8x16xf32, #tpu.memory_space<vmem>>, %arg7: memref<8x16xf32, #tpu.memory_space<vmem>>) attributes {dimension_semantics = [#tpu.dimension_semantics<parallel>, #tpu.dimension_semantics<parallel>, #tpu.dimension_semantics<arbitrary>], iteration_bounds = array<i64: 1, 1, 1>, scalar_prefetch = 0 : i64, scratch_operands = 1 : i64, tpu.core_type = #tpu.core_type<tc>, window_params = [{transform_indices = @transform_0, window_bounds = array<i64: 8, 32>}, {transform_indices = @transform_1, window_bounds = array<i64: 32, 16>}, {transform_indices = @transform_2, window_bounds = array<i64: 1, 16>}, {transform_indices = @transform_3, window_bounds = array<i64: 8, 16>}]} {
    %c0_i32 = arith.constant 0 : i32
    %0 = arith.cmpi eq, %arg2, %c0_i32 : i32
    %1 = arith.extui %0 : i1 to i32
    %c0_i32_0 = arith.constant 0 : i32
    %2 = arith.cmpi ne, %1, %c0_i32_0 : i32
    scf.if %2 {
      %cst_10 = arith.constant 0.000000e+00 : f32
      %12 = vector.broadcast %cst_10 : f32 to vector<8x16xf32>
      %c0_11 = arith.constant 0 : index
      %c0_12 = arith.constant 0 : index
      %13 = vector.load %arg7[%c0_11, %c0_12] : memref<8x16xf32, #tpu.memory_space<vmem>>, vector<8x16xf32>
      tpu.vector_store %arg7[%c0_11, %c0_12], %12 {strides = array<i32>} : memref<8x16xf32, #tpu.memory_space<vmem>>, vector<8x16xf32>,
    } else {
    }
    %c0 = arith.constant 0 : index
    %c0_1 = arith.constant 0 : index
    %3 = vector.load %arg7[%c0, %c0_1] : memref<8x16xf32, #tpu.memory_space<vmem>>, vector<8x16xf32>
    %c0_2 = arith.constant 0 : index
    %c0_3 = arith.constant 0 : index
    %4 = vector.load %arg3[%c0_2, %c0_3] : memref<8x32xf32, #tpu.memory_space<vmem>>, vector<8x32xf32>
    %c0_4 = arith.constant 0 : index
    %c0_5 = arith.constant 0 : index
    %5 = vector.load %arg4[%c0_4, %c0_5] : memref<32x16xf32, #tpu.memory_space<vmem>>, vector<32x16xf32>
    %cst = arith.constant dense<0.000000e+00> : vector<8x16xf32>
    %6 = tpu.matmul %4, %5, %cst {dimension_numbers = #tpu.dot_dimension_numbers<[1], [0], [0], [1], [0, 0, 1, 1], [], []>} : vector<8x32xf32>, vector<32x16xf32>, vector<8x16xf32> -> vector<8x16xf32>
    %7 = arith.addf %3, %6 : vector<8x16xf32>
    %c0_6 = arith.constant 0 : index
    %c0_7 = arith.constant 0 : index
    %8 = vector.load %arg7[%c0_6, %c0_7] : memref<8x16xf32, #tpu.memory_space<vmem>>, vector<8x16xf32>
    tpu.vector_store %arg7[%c0_6, %c0_7], %7 {strides = array<i32>} : memref<8x16xf32, #tpu.memory_space<vmem>>, vector<8x16xf32>,
    %c0_i32_8 = arith.constant 0 : i32
    %9 = arith.cmpi eq, %arg2, %c0_i32_8 : i32
    %10 = arith.extui %9 : i1 to i32
    %c0_i32_9 = arith.constant 0 : i32
    %11 = arith.cmpi ne, %10, %c0_i32_9 : i32
    scf.if %11 {
      %c0_10 = arith.constant 0 : index
      %c0_11 = arith.constant 0 : index
      %12 = vector.load %arg7[%c0_10, %c0_11] : memref<8x16xf32, #tpu.memory_space<vmem>>, vector<8x16xf32>
      %c0_12 = arith.constant 0 : index
      %c0_13 = arith.constant 0 : index
      %13 = vector.load %arg5[%c0_12, %c0_13] : memref<1x16xf32, #tpu.memory_space<vmem>>, vector<1x16xf32>
      %14 = vector.broadcast %13 : vector<1x16xf32> to vector<8x16xf32>
      %15 = arith.addf %12, %14 : vector<8x16xf32>
      %c0_14 = arith.constant 0 : index
      %c0_15 = arith.constant 0 : index
      %16 = vector.load %arg6[%c0_14, %c0_15] : memref<8x16xf32, #tpu.memory_space<vmem>>, vector<8x16xf32>
      tpu.vector_store %arg6[%c0_14, %c0_15], %15 {strides = array<i32>} : memref<8x16xf32, #tpu.memory_space<vmem>>, vector<8x16xf32>,
    } else {
    }
    return
  }
  func.func @transform_0(%arg0: i32, %arg1: i32, %arg2: i32) -> (i32, i32) {
    %c0_i32 = arith.constant 0 : i32
    return %arg0, %arg2 : i32, i32
  }
  func.func @transform_1(%arg0: i32, %arg1: i32, %arg2: i32) -> (i32, i32) {
    %c0_i32 = arith.constant 0 : i32
    return %arg2, %arg1 : i32, i32
  }
  func.func @transform_2(%arg0: i32, %arg1: i32, %arg2: i32) -> (i32, i32) {
    %c0_i32 = arith.constant 0 : i32
    %c0_i32_0 = arith.constant 0 : i32
    return %c0_i32, %arg1 : i32, i32
  }
  func.func @transform_3(%arg0: i32, %arg1: i32, %arg2: i32) -> (i32, i32) {
    %c0_i32 = arith.constant 0 : i32
    return %arg0, %arg1 : i32, i32
  }
}

</mosaic_0001>

<bundles_post_ra>
// kernel: tpu_custom_call.1
= control target key start
LH: loop header
LB: loop body
LE: loop exit
PB: predicated region body
PF: predicated region fallthrough
CT: control target
= control target key end

     0   :  { %vm19_vm0 = vcmask 130048   ;;  %v183_v3 = vmov 0.0|0.0   ;;  %v184_v6 = vmov 0.0   ;;  %s240_s0 = inlined_call_operand.vmem [shape: f32[8,32], index: 0, kind: input, shape index: {}]   ;;  %s241_s1 = inlined_call_operand.vmem [shape: f32[32,16], index: 1, kind: input, shape index: {}]   ;;  %s242_s2 = inlined_call_operand.vmem [shape: f32[1,16], index: 2, kind: input, shape index: {}]   ;;  %s243_s3 = inlined_call_operand.hbm [shape: f32[8,16], index: 3, kind: output, shape index: {}]  }
   0x1   :  { %v23_v0 = vld [vmem:[%s241_s1] sm:$0xff]  ;;  %v24_v1 = vld [vmem:[%s241_s1 + $0x8] sm:$0xff]  ;;  %v25_v2 = vld [vmem:[%s241_s1 + $0x10] sm:$0xff]  ;;  %149 = vmatprep.subr.bf16.mxu0 %v183_v3  ;;  %20 = vst.msk [vmem:[#allocation2] sm:$0xff] %vm19_vm0, %v184_v6 }
   0x2   :  { %v150_v4 = vpack.c.bf16 %v24_v1, %v23_v0  ;;  %v26_v5 = vld [vmem:[%s241_s1 + $0x18] sm:$0xff] }
   0x3   :  { %8 = vsyncpa [#allocation4], 0  ;;  %vm185_vm1 = vmmov 0   ;;  %v153_v7 = vpack.c.bf16 %v26_v5, %v25_v2  ;;  %v22_v8 = vld [vmem:[%s240_s0] sm:$0xff]  ;;  %vm27_vm2 = vcmask 261120   ;;  %s186_s23 = smov [#allocation3]  }
   0x4   :  { %146 = vmatprep.mubr.msk.f32.mxu0 %vm185_vm1, %v184_v6  ;;  %151 = vmatpush3.bf16.msra.mxu0 %v150_v4  ;;  %v132_v13 = vld [vmem:[%s242_s2] ss:$0 sm:$0xff]  ;;  %s123_s24 = sshll.u32 %s186_s23, 4  ;;  %s124_s24 = int_to_ptr.vmem [resolvable:$true] %s123_s24 }
   0x5   :  { %152 = vmatprep.subr.bf16.mxu0 %v183_v3  ;;  %s159_s0 = scalar_lea.vmem %s124_s24, 128  ;;  %p164_p1 = scmp.lt.s32.totalorder %s124_s24, %s124_s24 }
   0x6   :  { %p160_p0 = scmp.ne.s32.totalorder %s124_s24, %s159_s0  ;;  %p165_p2 = scmp.lt.s32.totalorder %s159_s0, %s159_s0 }
   0x8   :  { %154 = vmatpush3.bf16.msra.mxu0 %v153_v7  ;;  %v21_v9 = vld [vmem:[#allocation2] sm:$0xff]  ;;  %p166_p3 = por %p165_p2, %p164_p1 }
   0xa   :  { %p167_p4 = pnand %p166_p3, %p160_p0 }
   0xb   :  { %147 = vmatmul.mubr.msk.f32.vlgmr.msra.gmra.mrb[0].mxu0 %vm27_vm2, %v22_v8 }
  0xde   :  { %v97_v10 = vpop.f32.mrb[0].mxu0 }
  0xdf   :  { %v101_v11 = vadd.f32 %v97_v10, %v21_v9  ;;  %v148_v12 = vpop.f32.mrb[1].mxu0 }
  0xe1   :  { %103 = vst.msk [vmem:[#allocation2] sm:$0xff] %vm19_vm0, %v101_v11 }
  0xe8   :  { %v107_v14 = vld [vmem:[#allocation2] sm:$0xff] }
  0xe9   :  { %v115_v15 = vadd.f32 %v132_v13, %v107_v14 }
  0xeb   :  { %116 = vst.msk [vmem:[#allocation3] sm:$0xff] %vm19_vm0, %v115_v15 }
  0xec   :  { %170 = shalt.err (!%p167_p4)
}
  0xed   :  { %s171_s27 = scalar_lea.hbm %s243_s3, 128 }
  0xee   :  { %p172_p5 = scmp.ne.s32.totalorder %s243_s3, %s171_s27  ;;  %p175_p6 = scmp.lt.u32.totalorder %s171_s27, %s243_s3 }
  0xf0   :  { %p177_p7 = pnand %p175_p6, %p172_p5 }
  0xf2   :  { %180 = shalt.err (!%p177_p7)
}
  0xf3   :  { %126 = dma.vmem_to_hbm [thread:$0]  %s124_s24, 128, %s243_s3, [#allocation4]  }
  0xf4   :  { %181 = dma.done.wait [#allocation4], 128  }
  0xf5   :  { %182 = vsyncadd [#allocation4], 4294967168 }
  0xf6   :  { %130 = vsyncpa [#allocation4], 1 }

</bundles_post_ra>
